<compile_context>
chip_gen: v6e
topology: v6e:2x2x1
jax: 0.10.0
libtpu: 0.0.40
codegen_flags: <defaults>
</compile_context>

<pallas_src>
import functools

import jax
import jax.numpy as jnp
from jax import lax
from jax.experimental import pallas as pl
from jax.experimental.pallas import tpu as pltpu


def _round_up(x, m):
    return (x + m - 1) // m * m


def _l2_normalize(d):
    # per-sample L2 norm over the flattened feature axis:
    # torch.norm(d.view(B, -1), dim=1, keepdim=True) + 1e-8
    norm = jnp.sqrt(jnp.sum(d * d, axis=1, keepdims=True))
    return d * pl.reciprocal(norm + 1e-8, approx=True)


# ---------------------------------------------------------------------------
# Fused VAT forward kernel (one batch tile per grid step).
#   logits0 = x @ W + b                      (computed once, hoisted)
#   pred    = softmax(logits0)   logp0 = log_softmax(logits0)
#   d       = l2_normalize(d0)
#   repeat ip:  z = logits0 + xi*(d @ W)
#               d = l2_normalize((softmax(z) - pred) @ W^T)   # scale dropped
#   z       = logits0 + eps*(d @ W)
#   out row = sum_c pred * (logp0 - log_softmax(z))           (padded rows = 0)
# ---------------------------------------------------------------------------
def _vat_fused_kernel(xi, eps, ip, n_valid, tile_b,
                      x_ref, d0_ref, w_ref, wt_ref, b_ref, out_ref):
    w = w_ref[...]            # (F, C) bf16, grid-invariant (constant index map)
    wt = wt_ref[...]          # (C, F) bf16, grid-invariant
    b = b_ref[...]            # (1, C) f32

    # ---- unperturbed forward, computed ONCE (hoisted out of the VAT loop) ----
    logits0 = jnp.dot(x_ref[...], w, preferred_element_type=jnp.float32) + b
    m0 = jnp.max(logits0, axis=1, keepdims=True)
    e0 = jnp.exp(logits0 - m0)
    s0 = jnp.sum(e0, axis=1, keepdims=True)
    pred = e0 * pl.reciprocal(s0, approx=True)      # softmax; log(pred) not needed
    logp0 = (logits0 - m0) - jnp.log(s0)            # exact log-softmax(x @ W + b)

    # ---- d = l2_normalize(d0); all (TB, F) elementwise math stays in f32 ----
    d = _l2_normalize(d0_ref[...].astype(jnp.float32))

    # ---- power iteration on the adversarial direction (ip is a static int) ----
    for _ in range(ip):
        # perturbed logits via logits0 + xi*(d@W): no (TB,F) temp, no extra +b
        z = logits0 + xi * jnp.dot(d.astype(w.dtype), w,
                                   preferred_element_type=jnp.float32)
        mh = jnp.max(z, axis=1, keepdims=True)
        eh = jnp.exp(z - mh)
        s = eh * pl.reciprocal(jnp.sum(eh, axis=1, keepdims=True), approx=True)
        # dKL/dz = (softmax(z) - pred)/B, chained through x + xi*d.  The xi and
        # 1/B factors are dropped: l2_normalize is scale-invariant.
        g_logits = s - pred
        g = jnp.dot(g_logits.astype(wt.dtype), wt,
                    preferred_element_type=jnp.float32)
        d = _l2_normalize(g)

    # ---- lds partial: KL(pred || softmax(logits0 + eps*(d@W))) per row -------
    z = logits0 + eps * jnp.dot(d.astype(w.dtype), w,
                                preferred_element_type=jnp.float32)
    mh = jnp.max(z, axis=1, keepdims=True)
    logp_hat = (z - mh) - jnp.log(jnp.sum(jnp.exp(z - mh), axis=1, keepdims=True))
    elem = pred * (logp0 - logp_hat)                # (TB, C)
    row_kl = jnp.sum(elem, axis=1, keepdims=True)   # (TB, 1)

    # mask padded batch rows and emit a lane-dense (TB, 128) partial-KL block
    row = pl.program_id(0) * tile_b + lax.broadcasted_iota(
        jnp.int32, (tile_b, 128), 0)
    out_ref[...] = jnp.where(row < n_valid,
                             jnp.broadcast_to(row_kl, (tile_b, 128)), 0.0)


# ---------------------------------------------------------------------------
# VATLoss.forward wrapper (dis='kl', filter_batch=False)
# ---------------------------------------------------------------------------
def vat_loss(w, b, x, d0, xi=10.0, eps=1.0, ip=1, batch_tile=128):
    B = x.shape[0]
    x_flat = x.reshape(B, -1)
    d0_flat = d0.reshape(B, -1)
    F = x_flat.shape[1]
    C = w.shape[1]

    # --- batch tile: multiple of 16 (bf16 sublanes), sized for a VMEM budget
    #     that is safe on v7x's 64 MiB per-TC VMEM (and trivially on v5e/v6e).
    vmem_budget = 24 * 2**20
    bytes_per_row = 2 * (2 * F * 2) + 2 * F * 4     # dbl-buffered bf16 x&d0 + f32 d/g
    tb_budget = max(16, (vmem_budget // bytes_per_row) // 16 * 16)
    TB = max(16, min(_round_up(batch_tile, 16), _round_up(B, 16), tb_budget))
    B_pad = _round_up(B, TB)
    n_tiles = B_pad // TB

    # bf16 storage for the big (B,F) arrays and weights: halves HBM->VMEM DMA
    # and doubles MXU throughput; kernel math is f32.  Zero padding is exact:
    # padded rows contribute 0 to the KL (and are additionally masked in-kernel).
    pad = ((0, B_pad - B), (0, 0))
    x_p = jnp.pad(x_flat.astype(jnp.bfloat16), pad)
    d0_p = jnp.pad(d0_flat.astype(jnp.bfloat16), pad)
    w_b = w.astype(jnp.bfloat16)
    wt_b = w_b.T                 # loop-invariant; duplicate is tiny at C=16
    # TODO(synk): for large class counts, ship a single W copy and transpose it
    # once in-kernel (or dot_general over the class axis) instead of duplicating.
    b2 = b.reshape(1, C).astype(jnp.float32)

    resident = 2 * F * C * 2 + C * 4
    tile_bytes = n_tiles and (2 * (2 * TB * F * 2) + 2 * TB * F * 4 + 2 * TB * 128 * 4)
    vmem_limit = int(min(60 * 2**20, max(32 * 2**20, 2 * (resident + tile_bytes))))

    out = pl.pallas_call(
        functools.partial(_vat_fused_kernel, float(xi), float(eps), int(ip), B, TB),
        grid=(n_tiles,),
        in_specs=[
            pl.BlockSpec((TB, F), lambda i: (i, 0)),     # x tile   (pipelined)
            pl.BlockSpec((TB, F), lambda i: (i, 0)),     # d0 tile  (pipelined)
            pl.BlockSpec((F, C), lambda i: (0, 0)),      # W        (resident)
            pl.BlockSpec((C, F), lambda i: (0, 0)),      # W^T      (resident)
            pl.BlockSpec((1, C), lambda i: (0, 0)),      # b        (resident)
        ],
        out_specs=pl.BlockSpec((TB, 128), lambda i: (i, 0)),
        out_shape=jax.ShapeDtypeStruct((B_pad, 128), jnp.float32),
        compiler_params=pltpu.CompilerParams(
            dimension_semantics=("parallel",),           # batch tiles -> 2 TCs on v7x
            vmem_limit_bytes=vmem_limit,
        ),
    )(x_p, d0_p, w_b, wt_b, b2)

    # lane 0 of each row holds that sample's KL contribution (padded rows = 0);
    # 'batchmean' divides by the true batch size.
    return jnp.sum(out[:, 0]) / B


if __name__ == "__main__":
    key = jax.random.PRNGKey(0)
    kx, kd, kw = jax.random.split(key, 3)

    B, C, H, W = 2, 4, 16, 16          # NCHW, as in PyTorch
    NUM_CLASSES = 16
    F = C * H * W

    x = jax.random.normal(kx, (B, C, H, W), dtype=jnp.float32)
    # d = torch.rand(x.shape) - 0.5  (external random direction)
    d0 = jax.random.uniform(kd, (B, C, H, W), dtype=jnp.float32) - 0.5

    # deterministic synthetic model parameters (linear classifier)
    w = 0.02 * jax.random.normal(kw, (F, NUM_CLASSES), dtype=jnp.float32)
    b = jnp.zeros((1, NUM_CLASSES), dtype=jnp.float32)

    lds = jax.jit(vat_loss)(w, b, x, d0)
    jax.block_until_ready(lds)
    print("KERNEL_OK")
</pallas_src>

<mosaic_0001>
module attributes {stable_mosaic.version = 11 : i64} {
  func.func @_vat_fused_kernel(%arg0: i32, %arg1: memref<16x1024xbf16, #tpu.memory_space<vmem>>, %arg2: memref<16x1024xbf16, #tpu.memory_space<vmem>>, %arg3: memref<1024x16xbf16, #tpu.memory_space<vmem>>, %arg4: memref<16x1024xbf16, #tpu.memory_space<vmem>>, %arg5: memref<1x16xf32, #tpu.memory_space<vmem>>, %arg6: memref<16x128xf32, #tpu.memory_space<vmem>>) attributes {dimension_semantics = [#tpu.dimension_semantics<parallel>], iteration_bounds = array<i64: 1>, scalar_prefetch = 0 : i64, scratch_operands = 0 : i64, tpu.core_type = #tpu.core_type<tc>, window_params = [{transform_indices = @transform_0, window_bounds = array<i64: 16, 1024>}, {transform_indices = @transform_1, window_bounds = array<i64: 16, 1024>}, {pipeline_mode = #tpu.pipeline_mode<synchronous>, transform_indices = @transform_2, window_bounds = array<i64: 1024, 16>}, {pipeline_mode = #tpu.pipeline_mode<synchronous>, transform_indices = @transform_3, window_bounds = array<i64: 16, 1024>}, {pipeline_mode = #tpu.pipeline_mode<synchronous>, transform_indices = @transform_4, window_bounds = array<i64: 1, 16>}, {transform_indices = @transform_5, window_bounds = array<i64: 16, 128>}]} {
    %c0 = arith.constant 0 : index
    %c0_0 = arith.constant 0 : index
    %0 = vector.load %arg3[%c0, %c0_0] : memref<1024x16xbf16, #tpu.memory_space<vmem>>, vector<1024x16xbf16>
    %c0_1 = arith.constant 0 : index
    %c0_2 = arith.constant 0 : index
    %1 = vector.load %arg4[%c0_1, %c0_2] : memref<16x1024xbf16, #tpu.memory_space<vmem>>, vector<16x1024xbf16>
    %c0_3 = arith.constant 0 : index
    %c0_4 = arith.constant 0 : index
    %2 = vector.load %arg5[%c0_3, %c0_4] : memref<1x16xf32, #tpu.memory_space<vmem>>, vector<1x16xf32>
    %c0_5 = arith.constant 0 : index
    %c0_6 = arith.constant 0 : index
    %3 = vector.load %arg1[%c0_5, %c0_6] : memref<16x1024xbf16, #tpu.memory_space<vmem>>, vector<16x1024xbf16>
    %cst = arith.constant dense<0.000000e+00> : vector<16x16xf32>
    %4 = tpu.matmul %3, %0, %cst {dimension_numbers = #tpu.dot_dimension_numbers<[1], [0], [0], [1], [0, 0, 1, 1], [], []>} : vector<16x1024xbf16>, vector<1024x16xbf16>, vector<16x16xf32> -> vector<16x16xf32>
    %5 = vector.broadcast %2 : vector<1x16xf32> to vector<16x16xf32>
    %6 = arith.addf %4, %5 : vector<16x16xf32>
    %cst_7 = arith.constant dense<0xFF800000> : vector<16xf32>
    %7 = vector.multi_reduction <maximumf>, %6, %cst_7 [1] : vector<16x16xf32> to vector<16xf32>
    %8 = vector.shape_cast %7 : vector<16xf32> to vector<16x1xf32>
    %9 = vector.broadcast %8 : vector<16x1xf32> to vector<16x16xf32>
    %10 = arith.subf %6, %9 : vector<16x16xf32>
    %11 = math.exp %10 : vector<16x16xf32>
    %cst_8 = arith.constant dense<0.000000e+00> : vector<16xf32>
    %12 = vector.multi_reduction <add>, %11, %cst_8 [1] : vector<16x16xf32> to vector<16xf32>
    %13 = vector.shape_cast %12 : vector<16xf32> to vector<16x1xf32>
    %14 = tpu.reciprocal %13 {approx = true} : vector<16x1xf32> -> vector<16x1xf32>
    %15 = vector.broadcast %14 : vector<16x1xf32> to vector<16x16xf32>
    %16 = arith.mulf %11, %15 : vector<16x16xf32>
    %17 = vector.broadcast %8 : vector<16x1xf32> to vector<16x16xf32>
    %18 = arith.subf %6, %17 : vector<16x16xf32>
    %19 = math.log %13 : vector<16x1xf32>
    %20 = vector.broadcast %19 : vector<16x1xf32> to vector<16x16xf32>
    %21 = arith.subf %18, %20 : vector<16x16xf32>
    %c0_9 = arith.constant 0 : index
    %c0_10 = arith.constant 0 : index
    %22 = vector.load %arg2[%c0_9, %c0_10] : memref<16x1024xbf16, #tpu.memory_space<vmem>>, vector<16x1024xbf16>
    %23 = arith.extf %22 : vector<16x1024xbf16> to vector<16x1024xf32>
    %24 = arith.mulf %23, %23 : vector<16x1024xf32>
    %cst_11 = arith.constant dense<0.000000e+00> : vector<16xf32>
    %25 = vector.multi_reduction <add>, %24, %cst_11 [1] : vector<16x1024xf32> to vector<16xf32>
    %26 = vector.shape_cast %25 : vector<16xf32> to vector<16x1xf32>
    %27 = math.sqrt %26 : vector<16x1xf32>
    %cst_12 = arith.constant 9.99999993E-9 : f32
    %28 = vector.broadcast %cst_12 : f32 to vector<16x1xf32>
    %29 = arith.addf %27, %28 : vector<16x1xf32>
    %30 = tpu.reciprocal %29 {approx = true} : vector<16x1xf32> -> vector<16x1xf32>
    %31 = vector.broadcast %30 : vector<16x1xf32> to vector<16x1024xf32>
    %32 = arith.mulf %23, %31 : vector<16x1024xf32>
    %33 = arith.truncf %32 : vector<16x1024xf32> to vector<16x1024xbf16>
    %cst_13 = arith.constant dense<0.000000e+00> : vector<16x16xf32>
    %34 = tpu.matmul %33, %0, %cst_13 {dimension_numbers = #tpu.dot_dimension_numbers<[1], [0], [0], [1], [0, 0, 1, 1], [], []>} : vector<16x1024xbf16>, vector<1024x16xbf16>, vector<16x16xf32> -> vector<16x16xf32>
    %cst_14 = arith.constant 1.000000e+01 : f32
    %35 = vector.broadcast %cst_14 : f32 to vector<16x16xf32>
    %36 = arith.mulf %35, %34 : vector<16x16xf32>
    %37 = arith.addf %6, %36 : vector<16x16xf32>
    %cst_15 = arith.constant dense<0xFF800000> : vector<16xf32>
    %38 = vector.multi_reduction <maximumf>, %37, %cst_15 [1] : vector<16x16xf32> to vector<16xf32>
    %39 = vector.shape_cast %38 : vector<16xf32> to vector<16x1xf32>
    %40 = vector.broadcast %39 : vector<16x1xf32> to vector<16x16xf32>
    %41 = arith.subf %37, %40 : vector<16x16xf32>
    %42 = math.exp %41 : vector<16x16xf32>
    %cst_16 = arith.constant dense<0.000000e+00> : vector<16xf32>
    %43 = vector.multi_reduction <add>, %42, %cst_16 [1] : vector<16x16xf32> to vector<16xf32>
    %44 = vector.shape_cast %43 : vector<16xf32> to vector<16x1xf32>
    %45 = tpu.reciprocal %44 {approx = true} : vector<16x1xf32> -> vector<16x1xf32>
    %46 = vector.broadcast %45 : vector<16x1xf32> to vector<16x16xf32>
    %47 = arith.mulf %42, %46 : vector<16x16xf32>
    %48 = arith.subf %47, %16 : vector<16x16xf32>
    %49 = arith.truncf %48 : vector<16x16xf32> to vector<16x16xbf16>
    %cst_17 = arith.constant dense<0.000000e+00> : vector<16x1024xf32>
    %50 = tpu.matmul %49, %1, %cst_17 {dimension_numbers = #tpu.dot_dimension_numbers<[1], [0], [0], [1], [0, 0, 1, 1], [], []>} : vector<16x16xbf16>, vector<16x1024xbf16>, vector<16x1024xf32> -> vector<16x1024xf32>
    %51 = arith.mulf %50, %50 : vector<16x1024xf32>
    %cst_18 = arith.constant dense<0.000000e+00> : vector<16xf32>
    %52 = vector.multi_reduction <add>, %51, %cst_18 [1] : vector<16x1024xf32> to vector<16xf32>
    %53 = vector.shape_cast %52 : vector<16xf32> to vector<16x1xf32>
    %54 = math.sqrt %53 : vector<16x1xf32>
    %cst_19 = arith.constant 9.99999993E-9 : f32
    %55 = vector.broadcast %cst_19 : f32 to vector<16x1xf32>
    %56 = arith.addf %54, %55 : vector<16x1xf32>
    %57 = tpu.reciprocal %56 {approx = true} : vector<16x1xf32> -> vector<16x1xf32>
    %58 = vector.broadcast %57 : vector<16x1xf32> to vector<16x1024xf32>
    %59 = arith.mulf %50, %58 : vector<16x1024xf32>
    %60 = arith.truncf %59 : vector<16x1024xf32> to vector<16x1024xbf16>
    %cst_20 = arith.constant dense<0.000000e+00> : vector<16x16xf32>
    %61 = tpu.matmul %60, %0, %cst_20 {dimension_numbers = #tpu.dot_dimension_numbers<[1], [0], [0], [1], [0, 0, 1, 1], [], []>} : vector<16x1024xbf16>, vector<1024x16xbf16>, vector<16x16xf32> -> vector<16x16xf32>
    %cst_21 = arith.constant 1.000000e+00 : f32
    %62 = vector.broadcast %cst_21 : f32 to vector<16x16xf32>
    %63 = arith.mulf %62, %61 : vector<16x16xf32>
    %64 = arith.addf %6, %63 : vector<16x16xf32>
    %cst_22 = arith.constant dense<0xFF800000> : vector<16xf32>
    %65 = vector.multi_reduction <maximumf>, %64, %cst_22 [1] : vector<16x16xf32> to vector<16xf32>
    %66 = vector.shape_cast %65 : vector<16xf32> to vector<16x1xf32>
    %67 = vector.broadcast %66 : vector<16x1xf32> to vector<16x16xf32>
    %68 = arith.subf %64, %67 : vector<16x16xf32>
    %69 = vector.broadcast %66 : vector<16x1xf32> to vector<16x16xf32>
    %70 = arith.subf %64, %69 : vector<16x16xf32>
    %71 = math.exp %70 : vector<16x16xf32>
    %cst_23 = arith.constant dense<0.000000e+00> : vector<16xf32>
    %72 = vector.multi_reduction <add>, %71, %cst_23 [1] : vector<16x16xf32> to vector<16xf32>
    %73 = vector.shape_cast %72 : vector<16xf32> to vector<16x1xf32>
    %74 = math.log %73 : vector<16x1xf32>
    %75 = vector.broadcast %74 : vector<16x1xf32> to vector<16x16xf32>
    %76 = arith.subf %68, %75 : vector<16x16xf32>
    %77 = arith.subf %21, %76 : vector<16x16xf32>
    %78 = arith.mulf %16, %77 : vector<16x16xf32>
    %cst_24 = arith.constant dense<0.000000e+00> : vector<16xf32>
    %79 = vector.multi_reduction <add>, %78, %cst_24 [1] : vector<16x16xf32> to vector<16xf32>
    %80 = vector.shape_cast %79 : vector<16xf32> to vector<16x1xf32>
    %c16_i32 = arith.constant 16 : i32
    %81 = arith.muli %arg0, %c16_i32 : i32
    %82 = tpu.iota {dimensions = array<i32: 0>} : vector<16x128xi32>
    %83 = vector.broadcast %81 : i32 to vector<16x128xi32>
    %84 = arith.addi %83, %82 : vector<16x128xi32>
    %c2_i32 = arith.constant 2 : i32
    %85 = vector.broadcast %c2_i32 : i32 to vector<16x128xi32>
    %86 = arith.cmpi slt, %84, %85 : vector<16x128xi32>
    %87 = vector.shape_cast %80 : vector<16x1xf32> to vector<16x1xf32>
    %88 = vector.broadcast %87 : vector<16x1xf32> to vector<16x128xf32>
    %cst_25 = arith.constant 0.000000e+00 : f32
    %89 = vector.broadcast %cst_25 : f32 to vector<16x128xf32>
    %90 = arith.select %86, %88, %89 : vector<16x128xi1>, vector<16x128xf32>
    %c0_26 = arith.constant 0 : index
    %c0_27 = arith.constant 0 : index
    %91 = vector.load %arg6[%c0_26, %c0_27] : memref<16x128xf32, #tpu.memory_space<vmem>>, vector<16x128xf32>
    tpu.vector_store %arg6[%c0_26, %c0_27], %90 {strides = array<i32>} : memref<16x128xf32, #tpu.memory_space<vmem>>, vector<16x128xf32>,
    return
  }
  func.func @transform_0(%arg0: i32) -> (i32, i32) {
    %c0_i32 = arith.constant 0 : i32
    %c0_i32_0 = arith.constant 0 : i32
    return %arg0, %c0_i32 : i32, i32
  }
  func.func @transform_1(%arg0: i32) -> (i32, i32) {
    %c0_i32 = arith.constant 0 : i32
    %c0_i32_0 = arith.constant 0 : i32
    return %arg0, %c0_i32 : i32, i32
  }
  func.func @transform_2(%arg0: i32) -> (i32, i32) {
    %c0_i32 = arith.constant 0 : i32
    %c0_i32_0 = arith.constant 0 : i32
    %c0_i32_1 = arith.constant 0 : i32
    return %c0_i32, %c0_i32_0 : i32, i32
  }
  func.func @transform_3(%arg0: i32) -> (i32, i32) {
    %c0_i32 = arith.constant 0 : i32
    %c0_i32_0 = arith.constant 0 : i32
    %c0_i32_1 = arith.constant 0 : i32
    return %c0_i32, %c0_i32_0 : i32, i32
  }
  func.func @transform_4(%arg0: i32) -> (i32, i32) {
    %c0_i32 = arith.constant 0 : i32
    %c0_i32_0 = arith.constant 0 : i32
    %c0_i32_1 = arith.constant 0 : i32
    return %c0_i32, %c0_i32_0 : i32, i32
  }
  func.func @transform_5(%arg0: i32) -> (i32, i32) {
    %c0_i32 = arith.constant 0 : i32
    %c0_i32_0 = arith.constant 0 : i32
    return %arg0, %c0_i32 : i32, i32
  }
}

</mosaic_0001>

<bundles_post_ra>
// kernel: vat_loss.1
= control target key start
LH: loop header
LB: loop body
LE: loop exit
PB: predicated region body
PF: predicated region fallthrough
CT: control target
= control target key end

     0   :  { %vm760_vm4 = vcmask 130048   ;;  %s2977_s2 = inlined_call_operand.vmem [shape: bf16[1024,16], index: 2, kind: input, shape index: {}]   ;;  %s2978_s1 = inlined_call_operand.vmem [shape: bf16[16,1024], index: 1, kind: input, shape index: {}]   ;;  %s2979_s0 = inlined_call_operand.vmem [shape: bf16[16,1024], index: 0, kind: input, shape index: {}]   ;;  %s2980_s4 = inlined_call_operand.vmem [shape: f32[1,16], index: 4, kind: input, shape index: {}]   ;;  %s2981_s3 = inlined_call_operand.vmem [shape: bf16[16,1024], index: 3, kind: input, shape index: {}]   ;;  %s2982_s5 = inlined_call_operand.vmem [shape: f32[16,128], index: 5, kind: output, shape index: {}]  }
   0x1   :  { %v2112_v0 = vld [vmem:[%s2977_s2 + $0x78] sm:$0xff]   ;;  %v2135_v4 = vld [vmem:[%s2977_s2 + $0x70] sm:$0xff]   ;;  %v2159_v8 = vld [vmem:[%s2977_s2 + $0x68] sm:$0xff]  }
   0x2   :  { %v2117_v1 = vld [vmem:[%s2977_s2 + $0x38] sm:$0xff]   ;;  %1675 = vmatprep.subr.bf16.mxu0 %v2112_v0  ;;  %v2141_v5 = vld [vmem:[%s2977_s2 + $0x30] sm:$0xff]   ;;  %v2165_v9 = vld [vmem:[%s2977_s2 + $0x28] sm:$0xff]  }
   0x3   :  { %v2123_v2 = vld [vmem:[%s2977_s2 + $0xf8] sm:$0xff]   ;;  %1676 = vmatpush3.bf16.msra.mxu0 %v2117_v1  ;;  %v2147_v6 = vld [vmem:[%s2977_s2 + $0xf0] sm:$0xff]   ;;  %v2171_v10 = vld [vmem:[%s2977_s2 + $0xe8] sm:$0xff]  }
   0x4   :  { %v2129_v3 = vld [vmem:[%s2977_s2 + $0xb8] sm:$0xff]   ;;  %1697 = vmatprep.subr.bf16.mxu1 %v2123_v2  ;;  %1677 = vmatprep.subr.bf16.mxu0 %v2135_v4  ;;  %v2153_v7 = vld [vmem:[%s2977_s2 + $0xb0] sm:$0xff]   ;;  %v2177_v11 = vld [vmem:[%s2977_s2 + $0xa8] sm:$0xff]  }
   0x5   :  { %1698 = vmatpush3.bf16.msra.mxu1 %v2129_v3  ;;  %v2183_v12 = vld [vmem:[%s2977_s2 + $0x60] sm:$0xff]   ;;  %v2207_v16 = vld [vmem:[%s2977_s2 + $0x58] sm:$0xff]   ;;  %v790_v18 = vld [vmem:[%s2978_s1 + $0x8] sm:$0xff] }
   0x6   :  { %1699 = vmatprep.subr.bf16.mxu1 %v2147_v6  ;;  %v2189_v13 = vld [vmem:[%s2977_s2 + $0x20] sm:$0xff]   ;;  %v791_v19 = vld [vmem:[%s2978_s1 + $0x10] sm:$0xff]  ;;  %v2224_v22 = vunpack.c.l.bf16 %v790_v18  ;;  %v2226_v23 = vunpack.c.h.bf16 %v790_v18  ;;  %v792_v24 = vld [vmem:[%s2978_s1 + $0x18] sm:$0xff] }
   0x7   :  { %1678 = vmatpush3.bf16.msra.mxu0 %v2141_v5  ;;  %v2195_v14 = vld [vmem:[%s2977_s2 + $0xe0] sm:$0xff]   ;;  %v2234_v25 = vld [vmem:[%s2977_s2 + $0x18] sm:$0xff]   ;;  %v2236_v26 = vunpack.c.l.bf16 %v791_v19  ;;  %v2255_v32 = vunpack.c.h.bf16 %v791_v19  ;;  %v2263_v35 = vld [vmem:[%s2977_s2 + $0x50] sm:$0xff]   ;;  %v2283_v43 = vunpack.c.l.bf16 %v792_v24  ;;  %v2309_v53 = vunpack.c.h.bf16 %v792_v24 }
   0x8   :  { %1679 = vmatprep.subr.bf16.mxu0 %v2159_v8  ;;  %v2201_v15 = vld [vmem:[%s2977_s2 + $0xa0] sm:$0xff]   ;;  %v815_v29 = vmul.f32 %v2224_v22, %v2224_v22  ;;  %v2247_v30 = vld [vmem:[%s2977_s2 + $0xd8] sm:$0xff]   ;;  %v816_v33 = vmul.f32 %v2226_v23, %v2226_v23  ;;  %v794_v37 = vld [vmem:[%s2978_s1 + $0x28] sm:$0xff] }
   0x9   :  { %1700 = vmatpush3.bf16.msra.mxu1 %v2153_v7  ;;  %v789_v17 = vld [vmem:[%s2978_s1] sm:$0xff]  ;;  %3026 = vst [vmem:[#allocation2_spill] sm:$0xff] %v2236_v26  ;;  %v2253_v31 = vld [vmem:[%s2977_s2 + $0x98] sm:$0xff]   ;;  %v795_v38 = vld [vmem:[%s2978_s1 + $0x30] sm:$0xff]  ;;  %v2279_v41 = vunpack.c.l.bf16 %v794_v37  ;;  %v2281_v42 = vunpack.c.h.bf16 %v794_v37  ;;  %v817_v44 = vmul.f32 %v2236_v26, %v2236_v26  ;;  %v818_v54 = vmul.f32 %v2255_v32, %v2255_v32 }
   0xa   :  { %1701 = vmatprep.subr.bf16.mxu1 %v2171_v10  ;;  %v2220_v20 = vunpack.c.l.bf16 %v789_v17  ;;  %v2222_v21 = vunpack.c.h.bf16 %v789_v17  ;;  %v793_v36 = vld [vmem:[%s2978_s1 + $0x20] sm:$0xff]  ;;  %3027 = vst [vmem:[#allocation3_spill] sm:$0xff] %v2283_v43  ;;  %v796_v46 = vld [vmem:[%s2978_s1 + $0x38] sm:$0xff]  ;;  %v2294_v47 = vld [vmem:[%s2977_s2 + $0x10] sm:$0xff]   ;;  %v2296_v48 = vunpack.c.l.bf16 %v795_v38  ;;  %v2319_v57 = vunpack.c.h.bf16 %v795_v38 }
   0xb   :  { %1680 = vmatpush3.bf16.msra.mxu0 %v2165_v9  ;;  %v2275_v39 = vunpack.c.l.bf16 %v793_v36  ;;  %v2277_v40 = vunpack.c.h.bf16 %v793_v36  ;;  %v823_v51 = vmul.f32 %v2279_v41, %v2279_v41  ;;  %v2307_v52 = vld [vmem:[%s2977_s2 + $0xd0] sm:$0xff]   ;;  %v824_v58 = vmul.f32 %v2281_v42, %v2281_v42  ;;  %v2327_v60 = vld [vmem:[%s2977_s2 + $0x48] sm:$0xff]   ;;  %v2363_v37 = vld [vmem:[%s2977_s2 + $0x40] sm:$0xff]  }
   0xc   :  { %1681 = vmatprep.subr.bf16.mxu0 %v2183_v12  ;;  %v813_v27 = vmul.f32 %v2220_v20, %v2220_v20  ;;  %v814_v28 = vmul.f32 %v2222_v21, %v2222_v21  ;;  %3028 = vst [vmem:[#allocation4_spill] sm:$0xff] %v2296_v48  ;;  %v2317_v56 = vld [vmem:[%s2977_s2 + $0x90] sm:$0xff]   ;;  %v819_v61 = vmul.f32 %v2283_v43, %v2283_v43  ;;  %v2335_v63 = vld [vmem:[%s2977_s2 + $0x8] sm:$0xff]   ;;  %v2337_v17 = vunpack.c.l.bf16 %v796_v46  ;;  %v2499_v43 = vld [vmem:[%s2977_s2 + $0x158] sm:$0xff]  }
   0xd   :  { %1702 = vmatpush3.bf16.msra.mxu1 %v2177_v11  ;;  %v821_v49 = vmul.f32 %v2275_v39, %v2275_v39  ;;  %v822_v50 = vmul.f32 %v2277_v40, %v2277_v40  ;;  %v825_v18 = vmul.f32 %v2296_v48, %v2296_v48  ;;  %v2345_v24 = vld [vmem:[%s2977_s2 + $0xc8] sm:$0xff]   ;;  %3035 = vst [vmem:[#allocation11_spill] sm:$0xff] %v2499_v43  ;;  %v2504_v26 = vld [vmem:[%s2977_s2 + $0x118] sm:$0xff]  }
   0xe   :  { %1703 = vmatprep.subr.bf16.mxu1 %v2195_v14  ;;  %v829_v34 = vadd.f32 %v814_v28, %v813_v27  ;;  %3029 = vst [vmem:[#allocation5_spill] sm:$0xff] %v2337_v17  ;;  %v820_v27 = vmul.f32 %v2309_v53, %v2309_v53  ;;  %3036 = vst [vmem:[#allocation12_spill] sm:$0xff] %v2504_v26  ;;  %v2516_v48 = vld [vmem:[%s2977_s2 + $0x198] sm:$0xff]  }
   0xf   :  { %1682 = vmatpush3.bf16.msra.mxu0 %v2189_v13  ;;  %v838_v59 = vadd.f32 %v822_v50, %v821_v49  ;;  %v2377_v49 = vld [vmem:[%s2977_s2 + $0xc0] sm:$0xff]   ;;  %3038 = vst [vmem:[#allocation14_spill] sm:$0xff] %v2516_v48 }
  0x10   :  { %1683 = vmatprep.subr.bf16.mxu0 %v2207_v16  ;;  %v830_v45 = vadd.f32 %v829_v34, %v815_v29  ;;  %v2353_v29 = vld [vmem:[%s2977_s2 + $0x88] sm:$0xff]   ;;  %v826_v34 = vmul.f32 %v2319_v57, %v2319_v57 }
  0x11   :  { %1704 = vmatpush3.bf16.msra.mxu1 %v2201_v15  ;;  %v839_v19 = vadd.f32 %v838_v59, %v823_v51  ;;  %v2383_v51 = vld [vmem:[%s2977_s2 + $0x80] sm:$0xff]  }
  0x12   :  { %1705 = vmatprep.subr.bf16.mxu1 %v2247_v30  ;;  %v831_v55 = vadd.f32 %v830_v45, %v816_v33  ;;  %v2355_v33 = vunpack.c.h.bf16 %v796_v46  ;;  %v827_v45 = vmul.f32 %v2337_v17, %v2337_v17  ;;  %v162_v59 = vld [vmem:[%s2979_s0 + $0x20] sm:$0xff]  ;;  %v2510_v17 = vld [vmem:[%s2977_s2 + $0x1d8] sm:$0xff]  }
  0x13   :  { %1684 = vmatpush3.bf16.msra.mxu0 %v2234_v25  ;;  %v840_v36 = vadd.f32 %v839_v19, %v824_v58  ;;  %3037 = vst [vmem:[#allocation13_spill] sm:$0xff] %v2510_v17 }
  0x14   :  { %1685 = vmatprep.subr.bf16.mxu0 %v2263_v35  ;;  %v832_v62 = vadd.f32 %v831_v55, %v817_v44  ;;  %v2369_v44 = vld [vmem:[%s2977_s2] sm:$0xff]   ;;  %v828_v55 = vmul.f32 %v2355_v33, %v2355_v33 }
  0x15   :  { %1706 = vmatpush3.bf16.msra.mxu1 %v2253_v31  ;;  %v841_v46 = vadd.f32 %v840_v36, %v825_v18  ;;  %v2398_v18 = vld [vmem:[%s2977_s2 + $0x178] sm:$0xff]  }
  0x16   :  { %1707 = vmatprep.subr.bf16.mxu1 %v2307_v52  ;;  %v833_v28 = vadd.f32 %v832_v62, %v818_v54  ;;  %v158_v54 = vld [vmem:[%s2979_s0] sm:$0xff] }
  0x17   :  { %1686 = vmatpush3.bf16.msra.mxu0 %v2294_v47  ;;  %v842_v58 = vadd.f32 %v841_v46, %v826_v34  ;;  %v1592_v62 = vcombine.high %v158_v54, %v162_v59  ;;  %v163_v34 = vld [vmem:[%s2979_s0 + $0x28] sm:$0xff] }
  0x18   :  { %1687 = vmatprep.subr.bf16.mxu0 %v2327_v60  ;;  %v834_v38 = vadd.f32 %v833_v28, %v819_v61  ;;  %v1591_v61 = vcombine.low %v158_v54, %v162_v59  ;;  %v159_v28 = vld [vmem:[%s2979_s0 + $0x8] sm:$0xff]  ;;  %v2426_v54 = vld [vmem:[%s2977_s2 + $0x170] sm:$0xff]  }
  0x19   :  { %1708 = vmatpush3.bf16.msra.mxu1 %v2317_v56  ;;  %v843_v19 = vadd.f32 %v842_v58, %v827_v45  ;;  %628 = vmatprep.mubr.bf16.mxu0 %v1592_v62  ;;  %v1593_v36 = vcombine.low %v159_v28, %v163_v34  ;;  %v2415_v45 = vld [vmem:[%s2977_s2 + $0x1f8] sm:$0xff]   ;;  %v2438_v58 = vld [vmem:[%s2977_s2 + $0x1f0] sm:$0xff]   ;;  %v2456_v62 = vld [vmem:[%s2977_s2 + $0x128] sm:$0xff]  }
  0x1a   :  { %1709 = vmatprep.subr.bf16.mxu1 %v2345_v24  ;;  %v835_v50 = vadd.f32 %v834_v38, %v820_v27  ;;  %v2403_v27 = vld [vmem:[%s2977_s2 + $0x138] sm:$0xff]   ;;  %v1594_v38 = vcombine.high %v159_v28, %v163_v34  ;;  %v2444_v59 = vld [vmem:[%s2977_s2 + $0x1b0] sm:$0xff]   ;;  %v2468_v28 = vld [vmem:[%s2977_s2 + $0x1a8] sm:$0xff]  }
  0x1b   :  { %1688 = vmatpush3.bf16.msra.mxu0 %v2335_v63  ;;  %v844_v46 = vadd.f32 %v843_v19, %v828_v55  ;;  %v2432_v55 = vld [vmem:[%s2977_s2 + $0x130] sm:$0xff]   ;;  %v2462_v19 = vld [vmem:[%s2977_s2 + $0x1e8] sm:$0xff]   ;;  %3030 = vst [vmem:[#allocation6_spill] sm:$0xff] %v2468_v28  ;;  %v2475_v34 = vld [vmem:[%s2977_s2 + $0x160] sm:$0xff]  }
  0x1c   :  { %1689 = vmatprep.subr.bf16.mxu0 %v2363_v37  ;;  %836 = vadd.xlane.f32.xlu0 %v835_v50  ;;  %v2420_v50 = vld [vmem:[%s2977_s2 + $0x1b8] sm:$0xff]   ;;  %3031 = vst [vmem:[#allocation7_spill] sm:$0xff] %v2475_v34 }
  0x1d   :  { %1710 = vmatpush3.bf16.msra.mxu1 %v2353_v29  ;;  %669 = vmatprep.mubr.bf16.mxu1 %v1594_v38  ;;  %v2486_v38 = vld [vmem:[%s2977_s2 + $0x1e0] sm:$0xff]  }
  0x1e   :  { %1711 = vmatprep.subr.bf16.mxu1 %v2377_v49  ;;  %3033 = vst [vmem:[#allocation9_spill] sm:$0xff] %v2486_v38 }
  0x1f   :  { %1690 = vmatpush3.bf16.msra.mxu0 %v2369_v44 }
  0x20   :  { %1719 = vmatprep.subr.bf16.mxu0 %v2398_v18  ;;  %845 = vadd.xlane.f32.xlu0 %v844_v46  ;;  %v2492_v46 = vld [vmem:[%s2977_s2 + $0x1a0] sm:$0xff]  }
  0x21   :  { %1712 = vmatpush3.bf16.msra.mxu1 %v2383_v51  ;;  %3034 = vst [vmem:[#allocation10_spill] sm:$0xff] %v2492_v46 }
  0x22   :  { %629 = vmatmul.mubr.bf16.vlgmr.msra.gmra.mxu0 %v1591_v61  ;;  %1741 = vmatprep.subr.bf16.mxu1 %v2415_v45  ;;  %v2451_v61 = vld [vmem:[%s2977_s2 + $0x168] sm:$0xff]  }
  0x23   :  { %1720 = vmatpush3.bf16.msra.mxu0 %v2403_v27 }
  0x24   :  { %670 = vmatmul.mubr.bf16.vlgmr.msra.gmra.mxu1 %v1593_v36  ;;  %1721 = vmatprep.subr.bf16.mxu0 %v2426_v54  ;;  %v2480_v36 = vld [vmem:[%s2977_s2 + $0x120] sm:$0xff]  }
  0x25   :  { %1742 = vmatpush3.bf16.msra.mxu1 %v2420_v50  ;;  %3032 = vst [vmem:[#allocation8_spill] sm:$0xff] %v2480_v36 }
  0x26   :  { %1743 = vmatprep.subr.bf16.mxu1 %v2438_v58 }
  0x27   :  { %1722 = vmatpush3.bf16.msra.mxu0 %v2432_v55 }
  0x28   :  { %1723 = vmatprep.subr.bf16.mxu0 %v2451_v61 }
  0x29   :  { %1744 = vmatpush3.bf16.msra.mxu1 %v2444_v59 }
  0x2a   :  { %1745 = vmatprep.subr.bf16.mxu1 %v2462_v19 }
  0x2b   :  { %1724 = vmatpush3.bf16.msra.mxu0 %v2456_v62 }
  0x2c   :  { %1725 = vmatprep.subr.bf16.mxu0 %v2475_v34  ;;  %v2596_v34 = vld [vmem:[%s2977_s2 + $0x180] sm:$0xff]  }
  0x2d   :  { %1746 = vmatpush3.bf16.msra.mxu1 %v2468_v28  ;;  %v165_v28 = vld [vmem:[%s2979_s0 + $0x38] sm:$0xff] }
  0x2e   :  { %1747 = vmatprep.subr.bf16.mxu1 %v2486_v38 }
  0x2f   :  { %1726 = vmatpush3.bf16.msra.mxu0 %v2480_v36  ;;  %v2528_v36 = vld [vmem:[%s2977_s2 + $0x110] sm:$0xff]  }
  0x30   :  { %1727 = vmatprep.subr.bf16.mxu0 %v2499_v43  ;;  %v2523_v43 = vld [vmem:[%s2977_s2 + $0x150] sm:$0xff]   ;;  %3040 = vst [vmem:[#allocation16_spill] sm:$0xff] %v2528_v36 }
  0x31   :  { %1748 = vmatpush3.bf16.msra.mxu1 %v2492_v46  ;;  %3039 = vst [vmem:[#allocation15_spill] sm:$0xff] %v2523_v43  ;;  %v2534_v46 = vld [vmem:[%s2977_s2 + $0x1d0] sm:$0xff]  }
  0x32   :  { %1749 = vmatprep.subr.bf16.mxu1 %v2510_v17  ;;  %3041 = vst [vmem:[#allocation17_spill] sm:$0xff] %v2534_v46  ;;  %v2552_v17 = vld [vmem:[%s2977_s2 + $0x108] sm:$0xff]  }
  0x33   :  { %1728 = vmatpush3.bf16.msra.mxu0 %v2504_v26  ;;  %v2540_v26 = vld [vmem:[%s2977_s2 + $0x190] sm:$0xff]   ;;  %3044 = vst [vmem:[#allocation20_spill] sm:$0xff] %v2552_v17 }
  0x34   :  { %1729 = vmatprep.subr.bf16.mxu0 %v2523_v43  ;;  %3042 = vst [vmem:[#allocation18_spill] sm:$0xff] %v2540_v26  ;;  %v2547_v43 = vld [vmem:[%s2977_s2 + $0x148] sm:$0xff]  }
  0x35   :  { %1750 = vmatpush3.bf16.msra.mxu1 %v2516_v48  ;;  %3043 = vst [vmem:[#allocation19_spill] sm:$0xff] %v2547_v43  ;;  %v2558_v48 = vld [vmem:[%s2977_s2 + $0x1c8] sm:$0xff]  }
  0x36   :  { %1751 = vmatprep.subr.bf16.mxu1 %v2534_v46  ;;  %3045 = vst [vmem:[#allocation21_spill] sm:$0xff] %v2558_v48  ;;  %v2576_v46 = vld [vmem:[%s2977_s2 + $0x100] sm:$0xff]  }
  0x37   :  { %1730 = vmatpush3.bf16.msra.mxu0 %v2528_v36  ;;  %v2564_v36 = vld [vmem:[%s2977_s2 + $0x188] sm:$0xff]   ;;  %3048 = vst [vmem:[#allocation24_spill] sm:$0xff] %v2576_v46 }
  0x38   :  { %1731 = vmatprep.subr.bf16.mxu0 %v2547_v43  ;;  %3046 = vst [vmem:[#allocation22_spill] sm:$0xff] %v2564_v36  ;;  %v2571_v43 = vld [vmem:[%s2977_s2 + $0x140] sm:$0xff]  }
  0x39   :  { %1752 = vmatpush3.bf16.msra.mxu1 %v2540_v26  ;;  %3047 = vst [vmem:[#allocation23_spill] sm:$0xff] %v2571_v43  ;;  %v2582_v26 = vld [vmem:[%s2977_s2 + $0x1c0] sm:$0xff]  }
  0x3a   :  { %1753 = vmatprep.subr.bf16.mxu1 %v2558_v48  ;;  %3049 = vst [vmem:[#allocation25_spill] sm:$0xff] %v2582_v26  ;;  %v164_v48 = vld [vmem:[%s2979_s0 + $0x30] sm:$0xff] }
  0x3b   :  { %1732 = vmatpush3.bf16.msra.mxu0 %v2552_v17  ;;  %v160_v17 = vld [vmem:[%s2979_s0 + $0x10] sm:$0xff] }
  0x3c   :  { %1733 = vmatprep.subr.bf16.mxu0 %v2571_v43  ;;  %v1595_v43 = vcombine.low %v160_v17, %v164_v48  ;;  %v1596_v38 = vcombine.high %v160_v17, %v164_v48 }
  0x3d   :  { %1754 = vmatpush3.bf16.msra.mxu1 %v2564_v36  ;;  %v161_v36 = vld [vmem:[%s2979_s0 + $0x18] sm:$0xff] }
  0x3e   :  { %1755 = vmatprep.subr.bf16.mxu1 %v2582_v26  ;;  %710 = vmatprep.mubr.bf16.mxu0 %v1596_v38  ;;  %v1598_v26 = vcombine.high %v161_v36, %v165_v28 }
  0x3f   :  { %1734 = vmatpush3.bf16.msra.mxu0 %v2576_v46  ;;  %v1597_v46 = vcombine.low %v161_v36, %v165_v28  ;;  %v3065_v28 = vld [vmem:[#allocation20_spill] sm:$0xff]  ;;  %v3066_v36 = vld [vmem:[#allocation22_spill] sm:$0xff] }
  0x40   :  { %1763 = vmatprep.subr.bf16.mxu0 %v2112_v0  ;;  %751 = vmatprep.mubr.bf16.mxu1 %v1598_v26  ;;  %v3067_v38 = vld [vmem:[#allocation23_spill] sm:$0xff] }
  0x41   :  { %1756 = vmatpush3.bf16.msra.mxu1 %v2596_v34 }
  0x42   :  { %711 = vmatmul.mubr.bf16.vlgmr.msra.gmra.mxu0 %v1595_v43  ;;  %1785 = vmatprep.subr.bf16.mxu1 %v2123_v2 }
  0x43   :  { %1764 = vmatpush3.bf16.msra.mxu0 %v2117_v1 }
  0x44   :  { %752 = vmatmul.mubr.bf16.vlgmr.msra.gmra.mxu1 %v1597_v46  ;;  %1765 = vmatprep.subr.bf16.mxu0 %v2135_v4  ;;  %v3068_v46 = vld [vmem:[#allocation25_spill] sm:$0xff] }
  0x45   :  { %1786 = vmatpush3.bf16.msra.mxu1 %v2129_v3 }
  0x46   :  { %1787 = vmatprep.subr.bf16.mxu1 %v2147_v6 }
  0x47   :  { %1766 = vmatpush3.bf16.msra.mxu0 %v2141_v5 }
  0x48   :  { %1767 = vmatprep.subr.bf16.mxu0 %v2159_v8 }
  0x49   :  { %1788 = vmatpush3.bf16.msra.mxu1 %v2153_v7 }
  0x4a   :  { %1789 = vmatprep.subr.bf16.mxu1 %v2171_v10 }
  0x4b   :  { %1768 = vmatpush3.bf16.msra.mxu0 %v2165_v9 }
  0x4c   :  { %1769 = vmatprep.subr.bf16.mxu0 %v2183_v12 }
  0x4d   :  { %1790 = vmatpush3.bf16.msra.mxu1 %v2177_v11 }
  0x4e   :  { %1791 = vmatprep.subr.bf16.mxu1 %v2195_v14 }
  0x4f   :  { %1770 = vmatpush3.bf16.msra.mxu0 %v2189_v13 }
  0x50   :  { %1771 = vmatprep.subr.bf16.mxu0 %v2207_v16 }
  0x51   :  { %1792 = vmatpush3.bf16.msra.mxu1 %v2201_v15 }
  0x52   :  { %1793 = vmatprep.subr.bf16.mxu1 %v2247_v30 }
  0x53   :  { %1772 = vmatpush3.bf16.msra.mxu0 %v2234_v25 }
  0x54   :  { %1773 = vmatprep.subr.bf16.mxu0 %v2263_v35 }
  0x55   :  { %1794 = vmatpush3.bf16.msra.mxu1 %v2253_v31 }
  0x56   :  { %1795 = vmatprep.subr.bf16.mxu1 %v2307_v52 }
  0x57   :  { %1774 = vmatpush3.bf16.msra.mxu0 %v2294_v47 }
  0x58   :  { %1775 = vmatprep.subr.bf16.mxu0 %v2327_v60 }
  0x59   :  { %1796 = vmatpush3.bf16.msra.mxu1 %v2317_v56 }
  0x5a   :  { %1797 = vmatprep.subr.bf16.mxu1 %v2345_v24 }
  0x5b   :  { %1776 = vmatpush3.bf16.msra.mxu0 %v2335_v63 }
  0x5c   :  { %1777 = vmatprep.subr.bf16.mxu0 %v2363_v37 }
  0x5d   :  { %1798 = vmatpush3.bf16.msra.mxu1 %v2353_v29 }
  0x5e   :  { %1799 = vmatprep.subr.bf16.mxu1 %v2377_v49 }
  0x5f   :  { %1778 = vmatpush3.bf16.msra.mxu0 %v2369_v44 }
  0x60   :  { %1807 = vmatprep.subr.bf16.mxu0 %v2398_v18 }
  0x61   :  { %1800 = vmatpush3.bf16.msra.mxu1 %v2383_v51 }
  0x62   :  { %1829 = vmatprep.subr.bf16.mxu1 %v2415_v45 }
  0xa5   :  { %v837_v0 = vpop.xlane.xlu0 %836 }
  0xa6   :  { %2005 = vrsqrt.f32 %v837_v0  ;;  %vm849_vm0 = vcmp.eq.f32.partialorder %v837_v0, inf  ;;  %v852_v4 = vand.u32 2147483648, %v837_v0  ;;  %vm851_vm1 = vcmp.eq.f32.partialorder %v837_v0, 0.0 }
  0xa9   :  { %v846_v1 = vpop.xlane.xlu0 %845 }
  0xaa   :  { %2007 = vrsqrt.f32 %v846_v1  ;;  %vm856_vm2 = vcmp.eq.f32.partialorder %v846_v1, inf  ;;  %v859_v10 = vand.u32 2147483648, %v846_v1  ;;  %vm858_vm3 = vcmp.eq.f32.partialorder %v846_v1, 0.0 }
  0xb3   :  { %v2006_v2 = vpop.eup %2005 }
  0xb4   :  { %v848_v3 = vmul.f32 %v2006_v2, %v837_v0  ;;  %v3070_v2 = vld [vmem:[#allocation5_spill] sm:$0xff] }
  0xb6   :  { %v850_v5 = vsel %vm849_vm0, %v837_v0, %v848_v3  ;;  %v3069_v0 = vld [vmem:[#allocation4_spill] sm:$0xff] }
  0xb7   :  { %v853_v6 = vsel %vm851_vm1, %v852_v4, %v850_v5  ;;  %v2008_v7 = vpop.eup %2007  ;;  %v3071_v4 = vld [vmem:[#allocation2_spill] sm:$0xff] }
  0xb8   :  { %v861_v8 = vadd.f32 1e-08, %v853_v6  ;;  %v855_v9 = vmul.f32 %v2008_v7, %v846_v1  ;;  %v3072_v6 = vld [vmem:[#allocation3_spill] sm:$0xff] }
  0xba   :  { %v857_v11 = vsel %vm856_vm2, %v846_v1, %v855_v9  ;;  %2009 = vrcp.f32 %v861_v8  ;;  %v3073_v8 = vld [vmem:[#allocation24_spill] sm:$0xff] }
  0xbb   :  { %v860_v12 = vsel %vm858_vm3, %v859_v10, %v857_v11 }
  0xbc   :  { %v862_v13 = vadd.f32 1e-08, %v860_v12 }
  0xbe   :  { %2011 = vrcp.f32 %v862_v13 }
  0xc7   :  { %v2010_v14 = vpop.eup %2009 }
  0xc8   :  { %v866_v16 = vmul.f32 %v2010_v14, %v2222_v21  ;;  %v868_v25 = vmul.f32 %v2010_v14, %v2226_v23  ;;  %v865_v26 = vmul.f32 %v2010_v14, %v2220_v20  ;;  %v867_v30 = vmul.f32 %v2010_v14, %v2224_v22 }
  0xc9   :  { %v870_v20 = vmul.f32 %v2010_v14, %v2255_v32  ;;  %v872_v22 = vmul.f32 %v2010_v14, %v2309_v53  ;;  %v3050_v32 = vld [vmem:[#allocation6_spill] sm:$0xff]  ;;  %v3053_v53 = vld [vmem:[#allocation8_spill] sm:$0xff]  ;;  %v869_v5 = vmul.f32 %v2010_v14, %v3071_v4  ;;  %v871_v7 = vmul.f32 %v2010_v14, %v3072_v6 }
  0xcb   :  { %v2012_v15 = vpop.eup %2011 }
  0xcc   :  { %v874_v31 = vmul.f32 %v2012_v15, %v2277_v40  ;;  %v876_v35 = vmul.f32 %v2012_v15, %v2281_v42  ;;  %v873_v43 = vmul.f32 %v2012_v15, %v2275_v39  ;;  %v875_v47 = vmul.f32 %v2012_v15, %v2279_v41  ;;  %v3051_v41 = vld [vmem:[#allocation7_spill] sm:$0xff]  ;;  %v3052_v42 = vld [vmem:[#allocation9_spill] sm:$0xff] }
  0xcd   :  { %v878_v48 = vmul.f32 %v2012_v15, %v2319_v57  ;;  %v880_v52 = vmul.f32 %v2012_v15, %v2355_v33  ;;  %v3054_v57 = vld [vmem:[#allocation10_spill] sm:$0xff]  ;;  %v3055_v33 = vld [vmem:[#allocation11_spill] sm:$0xff]  ;;  %v877_v1 = vmul.f32 %v2012_v15, %v3069_v0  ;;  %v879_v3 = vmul.f32 %v2012_v15, %v3070_v2 }
  0xce   :  { %v882_v56 = vpack.c.bf16 %v874_v31, %v866_v16  ;;  %v884_v21 = vpack.c.bf16 %v876_v35, %v868_v25  ;;  %v881_v17 = vpack.c.bf16 %v873_v43, %v865_v26  ;;  %v883_v23 = vpack.c.bf16 %v875_v47, %v867_v30  ;;  %v1590_v15 = vld [vmem:[%s2980_s4] ss:$0 sm:$0xff] }
  0xcf   :  { %v886_v40 = vpack.c.bf16 %v878_v48, %v870_v20  ;;  %v888_v39 = vpack.c.bf16 %v880_v52, %v872_v22  ;;  %v885_v10 = vpack.c.bf16 %v877_v1, %v869_v5  ;;  %v887_v11 = vpack.c.bf16 %v879_v3, %v871_v7 }
  0xd0   :  { %921 = vmatprep.mubr.bf16.mxu0 %v882_v56  ;;  %962 = vmatprep.mubr.bf16.mxu1 %v884_v21 }
  0xd1   :  { %922 = vmatmul.mubr.bf16.vlgmr.msra.gmra.mxu0 %v881_v17  ;;  %963 = vmatmul.mubr.bf16.vlgmr.msra.gmra.mxu1 %v883_v23 }
  0xd2   :  { %1808 = vmatpush3.bf16.msra.mxu0 %v2403_v27  ;;  %1830 = vmatpush3.bf16.msra.mxu1 %v2420_v50  ;;  %v3056_v27 = vld [vmem:[#allocation13_spill] sm:$0xff]  ;;  %v3057_v50 = vld [vmem:[#allocation12_spill] sm:$0xff] }
  0xd3   :  { %1003 = vmatprep.mubr.bf16.mxu0 %v886_v40  ;;  %1044 = vmatprep.mubr.bf16.mxu1 %v888_v39 }
  0xd4   :  { %1809 = vmatprep.subr.bf16.mxu0 %v2426_v54  ;;  %1831 = vmatprep.subr.bf16.mxu1 %v2438_v58  ;;  %v3058_v54 = vld [vmem:[#allocation14_spill] sm:$0xff]  ;;  %v3060_v58 = vld [vmem:[#allocation17_spill] sm:$0xff] }
  0xd6   :  { %1810 = vmatpush3.bf16.msra.mxu0 %v2432_v55  ;;  %1832 = vmatpush3.bf16.msra.mxu1 %v2444_v59  ;;  %v3059_v55 = vld [vmem:[#allocation15_spill] sm:$0xff]  ;;  %v3061_v59 = vld [vmem:[#allocation16_spill] sm:$0xff] }
  0xd7   :  { %1811 = vmatprep.subr.bf16.mxu0 %v2451_v61  ;;  %1833 = vmatprep.subr.bf16.mxu1 %v2462_v19  ;;  %v3062_v61 = vld [vmem:[#allocation18_spill] sm:$0xff]  ;;  %v3064_v19 = vld [vmem:[#allocation21_spill] sm:$0xff] }
  0xda   :  { %1812 = vmatpush3.bf16.msra.mxu0 %v2456_v62  ;;  %1834 = vmatpush3.bf16.msra.mxu1 %v3050_v32  ;;  %v3063_v62 = vld [vmem:[#allocation19_spill] sm:$0xff] }
  0xdb   :  { %1813 = vmatprep.subr.bf16.mxu0 %v3051_v41  ;;  %1835 = vmatprep.subr.bf16.mxu1 %v3052_v42 }
  0xde   :  { %1814 = vmatpush3.bf16.msra.mxu0 %v3053_v53  ;;  %1836 = vmatpush3.bf16.msra.mxu1 %v3054_v57 }
  0xdf   :  { %1815 = vmatprep.subr.bf16.mxu0 %v3055_v33  ;;  %1837 = vmatprep.subr.bf16.mxu1 %v3056_v27 }
  0xe2   :  { %1816 = vmatpush3.bf16.msra.mxu0 %v3057_v50  ;;  %1838 = vmatpush3.bf16.msra.mxu1 %v3058_v54  ;;  %v1691_v9 = vpop.f32.mrf.mxu0 }
  0xe3   :  { %1817 = vmatprep.subr.bf16.mxu0 %v3059_v55  ;;  %1839 = vmatprep.subr.bf16.mxu1 %v3060_v58 }
  0xe4   :  { %v1713_v12 = vpop.f32.mrf.mxu1  ;;  %v1692_v13 = vpop.f32.mrf.mxu0 }
  0xe5   :  { %v1693_v26 = vadd.f32 %v1692_v13, %v1691_v9 }
  0xe6   :  { %1818 = vmatpush3.bf16.msra.mxu0 %v3061_v59  ;;  %1840 = vmatpush3.bf16.msra.mxu1 %v3062_v61  ;;  %v1714_v16 = vpop.f32.mrf.mxu1  ;;  %v1694_v25 = vpop.f32.mrf.mxu0 }
  0xe7   :  { %1819 = vmatprep.subr.bf16.mxu0 %v3063_v62  ;;  %1841 = vmatprep.subr.bf16.mxu1 %v3064_v19  ;;  %v631_v31 = vadd.f32 %v1693_v26, %v1590_v15  ;;  %v1715_v35 = vadd.f32 %v1714_v16, %v1713_v12 }
  0xe8   :  { %v1716_v30 = vpop.f32.mrf.mxu1  ;;  %v1695_v14 = vpop.f32.mrf.mxu0 }
  0xe9   :  { %v1696_v43 = vadd.f32 %v1695_v14, %v1694_v25  ;;  %v672_v52 = vadd.f32 %v1715_v35, %v631_v31 }
  0xea   :  { %1820 = vmatpush3.bf16.msra.mxu0 %v3065_v28  ;;  %1842 = vmatpush3.bf16.msra.mxu1 %v3066_v36  ;;  %v1717_v47 = vpop.f32.mrf.mxu1 }
  0xeb   :  { %1821 = vmatprep.subr.bf16.mxu0 %v3067_v38  ;;  %1843 = vmatprep.subr.bf16.mxu1 %v3068_v46  ;;  %v634_v56 = vadd.f32 %v1696_v43, %v1590_v15  ;;  %v1718_v21 = vadd.f32 %v1717_v47, %v1716_v30 }
  0xed   :  { %v675_v40 = vadd.f32 %v1718_v21, %v634_v56 }
  0xee   :  { %1822 = vmatpush3.bf16.msra.mxu0 %v3073_v8  ;;  %1844 = vmatpush3.bf16.msra.mxu1 %v2596_v34 }
  0xf1   :  { %1004 = vmatmul.mubr.bf16.vlgmr.msra.gmra.mxu0 %v885_v10  ;;  %1045 = vmatmul.mubr.bf16.vlgmr.msra.gmra.mxu1 %v887_v11 }
 0x102   :  { %v1735_v48 = vpop.f32.mrf.mxu0 }
 0x104   :  { %v1736_v17 = vpop.f32.mrf.mxu0  ;;  %v1757_v20 = vpop.f32.mrf.mxu1 }
 0x105   :  { %v1737_v23 = vadd.f32 %v1736_v17, %v1735_v48 }
 0x106   :  { %v1738_v22 = vpop.f32.mrf.mxu0  ;;  %v1758_v32 = vpop.f32.mrf.mxu1 }
 0x107   :  { %v713_v39 = vadd.f32 %v1737_v23, %v672_v52  ;;  %v1759_v0 = vadd.f32 %v1758_v32, %v1757_v20 }
 0x108   :  { %v1739_v1 = vpop.f32.mrf.mxu0  ;;  %v1760_v3 = vpop.f32.mrf.mxu1 }
 0x109   :  { %v1740_v2 = vadd.f32 %v1739_v1, %v1738_v22  ;;  %v2688_v4 = vadd.f32 %v1759_v0, %v713_v39 }
 0x10a   :  { %v1761_v6 = vpop.f32.mrf.mxu1 }
 0x10b   :  { %v716_v5 = vadd.f32 %v1740_v2, %v675_v40  ;;  %v1762_v7 = vadd.f32 %v1761_v6, %v1760_v3  ;;  %v761_v9 = vsel %vm760_vm4, %v2688_v4, -inf }
 0x10c   :  { %762 = vmax.xlane.f32.xlu1 %v761_v9 }
 0x10d   :  { %v757_v10 = vadd.f32 %v1762_v7, %v716_v5 }
 0x10f   :  { %v764_v11 = vsel %vm760_vm4, %v757_v10, -inf }
 0x110   :  { %765 = vmax.xlane.f32.xlu1 %v764_v11 }
 0x191   :  { %v1779_v12 = vpop.f32.mrf.mxu0  ;;  %v1801_v13 = vpop.f32.mrf.mxu1 }
 0x193   :  { %v1780_v25 = vpop.f32.mrf.mxu0  ;;  %v1802_v26 = vpop.f32.mrf.mxu1 }
 0x194   :  { %v1781_v52 = vadd.f32 %v1780_v25, %v1779_v12  ;;  %v1803_v56 = vadd.f32 %v1802_v26, %v1801_v13 }
 0x195   :  { %v763_v16 = vpop.xlane.xlu1 %762  ;;  %v1782_v15 = vpop.f32.mrf.mxu0 }
 0x196   :  { %v2694_v30 = vsub.f32 %v2688_v4, %v763_v16  ;;  %v1804_v14 = vpop.f32.mrf.mxu1  ;;  %v965_v40 = vadd.f32 %v1803_v56, %v1781_v52 }
 0x197   :  { %v1783_v47 = vpop.f32.mrf.mxu0 }
 0x198   :  { %v769_v35 = vmul.f32 1.442695, %v2694_v30  ;;  %v1805_v48 = vpop.f32.mrf.mxu1  ;;  %v1784_v39 = vadd.f32 %v1783_v47, %v1782_v15 }
 0x199   :  { %v766_v31 = vpop.xlane.xlu1 %765  ;;  %v1806_v32 = vadd.f32 %v1805_v48, %v1804_v14 }
 0x19a   :  { %v768_v43 = vsub.f32 %v757_v10, %v766_v31  ;;  %2013 = vpow2.f32 %v769_v35 }
 0x19b   :  { %v968_v9 = vadd.f32 %v1806_v32, %v1784_v39 }
 0x19c   :  { %v771_v23 = vmul.f32 1.442695, %v768_v43 }
 0x19e   :  { %2015 = vpow2.f32 %v771_v23 }
 0x1a7   :  { %v2699_v14 = vpop.eup %2013 }
 0x1a8   :  { %v773_v48 = vsel %vm760_vm4, %v2699_v14, 0.0 }
 0x1ab   :  { %v2016_v52 = vpop.eup %2015 }
 0x1ac   :  { %v776_v56 = vsel %vm760_vm4, %v2016_v52, 0.0 }
 0x1b1   :  { %v1823_v21 = vpop.f32.mrf.mxu0  ;;  %v1845_v17 = vpop.f32.mrf.mxu1 }
 0x1b3   :  { %v1824_v20 = vpop.f32.mrf.mxu0  ;;  %v1846_v22 = vpop.f32.mrf.mxu1 }
 0x1b4   :  { %v1825_v0 = vadd.f32 %v1824_v20, %v1823_v21  ;;  %v1847_v5 = vadd.f32 %v1846_v22, %v1845_v17 }
 0x1b5   :  { %v1826_v1 = vpop.f32.mrf.mxu0  ;;  %v1848_v2 = vpop.f32.mrf.mxu1 }
 0x1b6   :  { %v1006_v3 = vadd.f32 %v1825_v0, %v965_v40 }
 0x1b7   :  { %v1827_v6 = vpop.f32.mrf.mxu0  ;;  %v1849_v7 = vpop.f32.mrf.mxu1 }
 0x1b8   :  { %v1047_v11 = vadd.f32 %v1847_v5, %v1006_v3  ;;  %v1828_v12 = vadd.f32 %v1827_v6, %v1826_v1  ;;  %v1850_v25 = vadd.f32 %v1849_v7, %v1848_v2  ;;  %v149_v1 = vld [vmem:[%s2981_s3] sm:$0xff]  ;;  %v150_v3 = vld [vmem:[%s2981_s3 + $0x8] sm:$0xff]  ;;  %v2077_v5 = vmov 0  }
 0x1b9   :  { %v153_v2 = vld [vmem:[%s2981_s3 + $0x20] sm:$0xff]  ;;  %1157 = vmatprep.mubr.bf16.mxu0 %v2077_v5  ;;  %1200 = vmatprep.mubr.bf16.mxu1 %v2077_v5 }
 0x1ba   :  { %v1053_v13 = vmul.f32 10.0, %v1047_v11  ;;  %v1009_v16 = vadd.f32 %v1828_v12, %v968_v9  ;;  %v1663_v6 = vcombine.low %v149_v1, %v153_v2  ;;  %v1664_v7 = vcombine.high %v149_v1, %v153_v2  ;;  %v154_v9 = vld [vmem:[%s2981_s3 + $0x28] sm:$0xff]  ;;  %v151_v11 = vld [vmem:[%s2981_s3 + $0x10] sm:$0xff] }
 0x1bb   :  { %v155_v12 = vld [vmem:[%s2981_s3 + $0x30] sm:$0xff] }
 0x1bc   :  { %v1050_v26 = vadd.f32 %v1850_v25, %v1009_v16  ;;  %v1055_v31 = vadd.f32 %v1053_v13, %v2688_v4  ;;  %v1665_v13 = vcombine.low %v150_v3, %v154_v9  ;;  %v1666_v16 = vcombine.high %v150_v3, %v154_v9  ;;  %1139 = vmatprep.subr.bf16.mxu0 %v1664_v7  ;;  %v2048_v7 = vld [vmem:[%s2977_s2 + $0xf0] sm:$0xff]  }
 0x1bd   :  { %v1667_v25 = vcombine.low %v151_v11, %v155_v12  ;;  %1140 = vmatpush1.bf16.msra.mxu0 %v1663_v6  ;;  %v2049_v9 = vld [vmem:[%s2977_s2 + $0x30] sm:$0xff]  }
 0x1be   :  { %v1054_v35 = vmul.f32 10.0, %v1050_v26  ;;  %v1057_v15 = vsel %vm760_vm4, %v1055_v31, -inf  ;;  %v1668_v26 = vcombine.high %v151_v11, %v155_v12  ;;  %1182 = vmatprep.subr.bf16.mxu1 %v1666_v16  ;;  %v2050_v11 = vld [vmem:[%s2977_s2 + $0xb0] sm:$0xff]   ;;  %v2051_v12 = vld [vmem:[%s2977_s2 + $0x68] sm:$0xff]  }
 0x1bf   :  { %1058 = vmax.xlane.f32.xlu0 %v1057_v15  ;;  %1183 = vmatpush1.bf16.msra.mxu1 %v1665_v13  ;;  %v2052_v13 = vld [vmem:[%s2977_s2 + $0xe8] sm:$0xff]  }
 0x1c0   :  { %v1056_v43 = vadd.f32 %v1054_v35, %v757_v10  ;;  %1225 = vmatprep.subr.bf16.mxu0 %v1668_v26  ;;  %v156_v35 = vld [vmem:[%s2981_s3 + $0x38] sm:$0xff]  ;;  %v2053_v16 = vld [vmem:[%s2977_s2 + $0x28] sm:$0xff]   ;;  %v2055_v26 = vld [vmem:[%s2977_s2 + $0x60] sm:$0xff]  }
 0x1c2   :  { %v1060_v47 = vsel %vm760_vm4, %v1056_v43, -inf }
 0x1c3   :  { %1061 = vmax.xlane.f32.xlu1 %v1060_v47  ;;  %774 = vadd.xlane.f32.xlu0 %v773_v48 }
 0x1c7   :  { %777 = vadd.xlane.f32.xlu1 %v776_v56 }
 0x248   :  { %v1059_v21 = vpop.xlane.xlu0 %1058 }
 0x249   :  { %v1063_v17 = vsub.f32 %v1055_v31, %v1059_v21  ;;  %v152_v31 = vld [vmem:[%s2981_s3 + $0x18] sm:$0xff] }
 0x24a   :  { %v1669_v15 = vcombine.low %v152_v31, %v156_v35 }
 0x24b   :  { %v1065_v23 = vmul.f32 1.442695, %v1063_v17 }
 0x24c   :  { %v1062_v20 = vpop.xlane.xlu1 %1061  ;;  %v2731_v47 = vpop.xlane.xlu0 %774 }
 0x24d   :  { %2017 = vpow2.f32 %v1065_v23  ;;  %v1064_v22 = vsub.f32 %v1056_v43, %v1062_v20  ;;  %v1670_v43 = vcombine.high %v152_v31, %v156_v35  ;;  %v2056_v31 = vld [vmem:[%s2977_s2 + $0xe0] sm:$0xff]  }
 0x24e   :  { %v2057_v35 = vld [vmem:[%s2977_s2 + $0x20] sm:$0xff]  }
 0x24f   :  { %v1067_v40 = vmul.f32 1.442695, %v1064_v22  ;;  %1268 = vmatprep.subr.bf16.mxu1 %v1670_v43  ;;  %v2059_v43 = vld [vmem:[%s2977_s2 + $0x58] sm:$0xff]  }
 0x250   :  { %v778_v48 = vpop.xlane.xlu1 %777 }
 0x251   :  { %2019 = vpow2.f32 %v1067_v40 }
 0x25a   :  { %v2018_v10 = vpop.eup %2017 }
 0x25b   :  { %v1069_v39 = vsel %vm760_vm4, %v2018_v10, 0.0 }
 0x25c   :  { %1070 = vadd.xlane.f32.xlu0 %v1069_v39 }
 0x25e   :  { %v2020_v32 = vpop.eup %2019 }
 0x25f   :  { %v1072_v0 = vsel %vm760_vm4, %v2020_v32, 0.0 }
 0x260   :  { %1073 = vadd.xlane.f32.xlu1 %v1072_v0 }
 0x2e5   :  { %v1071_v56 = vpop.xlane.xlu0 %1070 }
 0x2e6   :  { %2021 = vrcp.f32 %v1071_v56  ;;  %v2061_v56 = vld [vmem:[%s2977_s2 + $0x18] sm:$0xff]  }
 0x2e7   :  { %2023 = vrcp.f32 %v2731_v47 }
 0x2e8   :  { %2025 = vrcp.f32 %v778_v48  ;;  %v2060_v48 = vld [vmem:[%s2977_s2 + $0xd8] sm:$0xff]  }
 0x2e9   :  { %v1074_v21 = vpop.xlane.xlu1 %1073 }
 0x2ea   :  { %2027 = vrcp.f32 %v1074_v21  ;;  %v2062_v21 = vld [vmem:[%s2977_s2 + $0x98] sm:$0xff]  }
 0x2f3   :  { %v2022_v17 = vpop.eup %2021 }
 0x2f4   :  { %v2024_v23 = vpop.eup %2023  ;;  %v1077_v22 = vmul.f32 %v2022_v17, %v2018_v10  ;;  %v2043_v10 = vld [vmem:[%s2977_s2 + $0x78] sm:$0xff]   ;;  %v2063_v17 = vld [vmem:[%s2977_s2 + $0x50] sm:$0xff]  }
 0x2f5   :  { %v2026_v20 = vpop.eup %2025  ;;  %v2735_v39 = vmul.f32 %v2024_v23, %v2699_v14  ;;  %v2044_v14 = vld [vmem:[%s2977_s2 + $0xf8] sm:$0xff]   ;;  %v2064_v23 = vld [vmem:[%s2977_s2 + $0xd0] sm:$0xff]  }
 0x2f6   :  { %v782_v0 = vmul.f32 %v2026_v20, %v2016_v52  ;;  %v2045_v52 = vld [vmem:[%s2977_s2 + $0x38] sm:$0xff]   ;;  %v2065_v20 = vld [vmem:[%s2977_s2 + $0x10] sm:$0xff]  }
 0x2f7   :  { %v2028_v40 = vpop.eup %2027  ;;  %v1079_v2 = vsub.f32 %v1077_v22, %v2735_v39  ;;  %v2066_v22 = vld [vmem:[%s2977_s2 + $0x90] sm:$0xff]  }
 0x2f8   :  { %v1078_v1 = vmul.f32 %v2028_v40, %v2020_v32  ;;  %v2046_v32 = vld [vmem:[%s2977_s2 + $0xb8] sm:$0xff]  }
 0x2fa   :  { %v1080_v3 = vsub.f32 %v1078_v1, %v782_v0 }
 0x2fc   :  { %v1081_v6 = vpack.c.bf16 %v1080_v3, %v1079_v2 }
 0x2fe   :  { %1671 = vmatmul.mubr.msk.bf16.vlgmr.msra.gmra.mxu0 %vm760_vm4, %v1081_v6  ;;  %1672 = vmatmul.mubr.msk.bf16.vlgmr.msra.gmra.mxu1 %vm760_vm4, %v1081_v6 }
 0x2ff   :  { %1226 = vmatpush1.bf16.msra.mxu0 %v1667_v25  ;;  %1269 = vmatpush1.bf16.msra.mxu1 %v1669_v15  ;;  %v2054_v25 = vld [vmem:[%s2977_s2 + $0xa8] sm:$0xff]   ;;  %v2058_v15 = vld [vmem:[%s2977_s2 + $0xa0] sm:$0xff]  }
 0x300   :  { %1243 = vmatprep.mubr.bf16.mxu0 %v2077_v5  ;;  %1286 = vmatprep.mubr.bf16.mxu1 %v2077_v5  ;;  %v2047_v5 = vld [vmem:[%s2977_s2 + $0x70] sm:$0xff]  }
 0x301   :  { %1851 = vmatprep.subr.bf16.mxu0 %v2043_v10  ;;  %1873 = vmatprep.subr.bf16.mxu1 %v2044_v14 }
 0x306   :  { %1673 = vmatmul.mubr.msk.bf16.vlgmr.msra.gmra.mxu0 %vm760_vm4, %v1081_v6  ;;  %1674 = vmatmul.mubr.msk.bf16.vlgmr.msra.gmra.mxu1 %vm760_vm4, %v1081_v6 }
 0x307   :  { %1852 = vmatpush3.bf16.msra.mxu0 %v2045_v52  ;;  %1874 = vmatpush3.bf16.msra.mxu1 %v2046_v32 }
 0x308   :  { %1853 = vmatprep.subr.bf16.mxu0 %v2047_v5  ;;  %1875 = vmatprep.subr.bf16.mxu1 %v2048_v7 }
 0x30b   :  { %1854 = vmatpush3.bf16.msra.mxu0 %v2049_v9  ;;  %1876 = vmatpush3.bf16.msra.mxu1 %v2050_v11 }
 0x30c   :  { %1855 = vmatprep.subr.bf16.mxu0 %v2051_v12  ;;  %1877 = vmatprep.subr.bf16.mxu1 %v2052_v13 }
 0x30f   :  { %1856 = vmatpush3.bf16.msra.mxu0 %v2053_v16  ;;  %1878 = vmatpush3.bf16.msra.mxu1 %v2054_v25 }
 0x310   :  { %1857 = vmatprep.subr.bf16.mxu0 %v2055_v26  ;;  %1879 = vmatprep.subr.bf16.mxu1 %v2056_v31 }
 0x313   :  { %1858 = vmatpush3.bf16.msra.mxu0 %v2057_v35  ;;  %1880 = vmatpush3.bf16.msra.mxu1 %v2058_v15 }
 0x314   :  { %1859 = vmatprep.subr.bf16.mxu0 %v2059_v43  ;;  %1881 = vmatprep.subr.bf16.mxu1 %v2060_v48 }
 0x317   :  { %1860 = vmatpush3.bf16.msra.mxu0 %v2061_v56  ;;  %1882 = vmatpush3.bf16.msra.mxu1 %v2062_v21 }
 0x318   :  { %1861 = vmatprep.subr.bf16.mxu0 %v2063_v17  ;;  %1883 = vmatprep.subr.bf16.mxu1 %v2064_v23 }
 0x31b   :  { %1862 = vmatpush3.bf16.msra.mxu0 %v2065_v20  ;;  %1884 = vmatpush3.bf16.msra.mxu1 %v2066_v22 }
 0x31c   :  { %1863 = vmatprep.subr.bf16.mxu0 %v2327_v60  ;;  %1885 = vmatprep.subr.bf16.mxu1 %v2345_v24 }
 0x31f   :  { %1864 = vmatpush3.bf16.msra.mxu0 %v2335_v63  ;;  %1886 = vmatpush3.bf16.msra.mxu1 %v2353_v29 }
 0x320   :  { %1865 = vmatprep.subr.bf16.mxu0 %v2363_v37  ;;  %1887 = vmatprep.subr.bf16.mxu1 %v2377_v49 }
 0x323   :  { %1866 = vmatpush3.bf16.msra.mxu0 %v2369_v44  ;;  %1888 = vmatpush3.bf16.msra.mxu1 %v2383_v51 }
 0x324   :  { %1895 = vmatprep.subr.bf16.mxu0 %v2398_v18  ;;  %1917 = vmatprep.subr.bf16.mxu1 %v2415_v45 }
 0x3be   :  { %v2824_v40 = vpop.f32.mrf.mxu0  ;;  %v2826_v60 = vpop.f32.mrf.mxu1 }
 0x3bf   :  { %v1297_v29 = vmul.f32 %v2824_v40, %v2824_v40  ;;  %v1299_v51 = vmul.f32 %v2826_v60, %v2826_v60 }
 0x3c0   :  { %v2828_v24 = vpop.f32.mrf.mxu0  ;;  %v2830_v63 = vpop.f32.mrf.mxu1 }
 0x3c1   :  { %v1298_v37 = vmul.f32 %v2828_v24, %v2828_v24  ;;  %v1300_v1 = vmul.f32 %v2830_v63, %v2830_v63 }
 0x3c2   :  { %v2836_v44 = vpop.f32.mrf.mxu0  ;;  %v2838_v49 = vpop.f32.mrf.mxu1 }
 0x3c3   :  { %v1313_v18 = vadd.f32 %v1298_v37, %v1297_v29  ;;  %v1305_v3 = vmul.f32 %v2836_v44, %v2836_v44  ;;  %v1307_v32 = vmul.f32 %v2838_v49, %v2838_v49 }
 0x3c4   :  { %v2842_v45 = vpop.f32.mrf.mxu0  ;;  %v2844_v0 = vpop.f32.mrf.mxu1 }
 0x3c5   :  { %v1314_v2 = vadd.f32 %v1313_v18, %v1299_v51  ;;  %v1306_v6 = vmul.f32 %v2842_v45, %v2842_v45  ;;  %v1308_v12 = vmul.f32 %v2844_v0, %v2844_v0 }
 0x3c6   :  { %v2852_v10 = vpop.f32.mrf.mxu0  ;;  %v2854_v14 = vpop.f32.mrf.mxu1 }
 0x3c7   :  { %v1315_v52 = vadd.f32 %v1314_v2, %v1300_v1  ;;  %v1322_v5 = vadd.f32 %v1306_v6, %v1305_v3  ;;  %v1301_v7 = vmul.f32 %v2852_v10, %v2852_v10  ;;  %v1303_v15 = vmul.f32 %v2854_v14, %v2854_v14 }
 0x3c8   :  { %v2860_v9 = vpop.f32.mrf.mxu0  ;;  %v2862_v11 = vpop.f32.mrf.mxu1 }
 0x3c9   :  { %v1323_v13 = vadd.f32 %v1322_v5, %v1307_v32  ;;  %v1316_v16 = vadd.f32 %v1315_v52, %v1301_v7  ;;  %v1302_v25 = vmul.f32 %v2860_v9, %v2860_v9  ;;  %v1304_v21 = vmul.f32 %v2862_v11, %v2862_v11 }
 0x3ca   :  { %v2868_v26 = vpop.f32.mrf.mxu0  ;;  %v2870_v31 = vpop.f32.mrf.mxu1 }
 0x3cb   :  { %v1324_v35 = vadd.f32 %v1323_v13, %v1308_v12  ;;  %v1317_v43 = vadd.f32 %v1316_v16, %v1302_v25  ;;  %v1309_v48 = vmul.f32 %v2868_v26, %v2868_v26  ;;  %v1311_v29 = vmul.f32 %v2870_v31, %v2870_v31 }
 0x3cc   :  { %v1251_v56 = vpop.f32.mrf.mxu0  ;;  %v1294_v22 = vpop.f32.mrf.mxu1 }
 0x3cd   :  { %v1325_v17 = vadd.f32 %v1324_v35, %v1309_v48  ;;  %v1310_v23 = vmul.f32 %v1251_v56, %v1251_v56  ;;  %v1318_v20 = vadd.f32 %v1317_v43, %v1303_v15  ;;  %v1312_v18 = vmul.f32 %v1294_v22, %v1294_v22 }
 0x3cf   :  { %v1326_v37 = vadd.f32 %v1325_v17, %v1310_v23  ;;  %v1319_v51 = vadd.f32 %v1318_v20, %v1304_v21 }
 0x3d1   :  { %1320 = vadd.xlane.f32.xlu0 %v1319_v51  ;;  %v1327_v1 = vadd.f32 %v1326_v37, %v1311_v29 }
 0x3d3   :  { %v1328_v2 = vadd.f32 %v1327_v1, %v1312_v18 }
 0x3d5   :  { %1329 = vadd.xlane.f32.xlu1 %v1328_v2 }
 0x45a   :  { %v1321_v3 = vpop.xlane.xlu0 %1320 }
 0x45b   :  { %2029 = vrsqrt.f32 %v1321_v3  ;;  %vm1333_vm5 = vcmp.eq.f32.partialorder %v1321_v3, inf  ;;  %v1336_v5 = vand.u32 2147483648, %v1321_v3  ;;  %vm1335_vm6 = vcmp.eq.f32.partialorder %v1321_v3, 0.0 }
 0x45e   :  { %v1330_v6 = vpop.xlane.xlu1 %1329 }
 0x45f   :  { %2031 = vrsqrt.f32 %v1330_v6  ;;  %vm1340_vm7 = vcmp.eq.f32.partialorder %v1330_v6, inf  ;;  %v1343_v35 = vand.u32 2147483648, %v1330_v6  ;;  %vm1342_vm8 = vcmp.eq.f32.partialorder %v1330_v6, 0.0 }
 0x468   :  { %v2030_v52 = vpop.eup %2029 }
 0x469   :  { %v1332_v32 = vmul.f32 %v2030_v52, %v1321_v3  ;;  %v2071_v52 = vld [vmem:[%s2977_s2 + $0x130] sm:$0xff]  }
 0x46b   :  { %v1334_v7 = vsel %vm1333_vm5, %v1321_v3, %v1332_v32  ;;  %v2072_v32 = vld [vmem:[%s2977_s2 + $0x1b0] sm:$0xff]  }
 0x46c   :  { %v2032_v12 = vpop.eup %2031  ;;  %v1337_v13 = vsel %vm1335_vm6, %v1336_v5, %v1334_v7  ;;  %v2073_v5 = vld [vmem:[%s2977_s2 + $0x168] sm:$0xff]  }
 0x46d   :  { %v1345_v16 = vadd.f32 1e-08, %v1337_v13  ;;  %v1339_v25 = vmul.f32 %v2032_v12, %v1330_v6  ;;  %v2074_v7 = vld [vmem:[%s2977_s2 + $0x1e8] sm:$0xff]  }
 0x46e   :  { %v2075_v12 = vld [vmem:[%s2977_s2 + $0x128] sm:$0xff]  }
 0x46f   :  { %v1341_v15 = vsel %vm1340_vm7, %v1330_v6, %v1339_v25  ;;  %2033 = vrcp.f32 %v1345_v16  ;;  %v2076_v13 = vld [vmem:[%s2977_s2 + $0x1a8] sm:$0xff]  }
 0x470   :  { %v1344_v43 = vsel %vm1342_vm8, %v1343_v35, %v1341_v15 }
 0x471   :  { %v1346_v48 = vadd.f32 1e-08, %v1344_v43 }
 0x473   :  { %2035 = vrcp.f32 %v1346_v48 }
 0x47c   :  { %v2880_v21 = vpop.eup %2033 }
 0x47d   :  { %v1350_v23 = vmul.f32 %v2880_v21, %v2828_v24  ;;  %v1352_v20 = vmul.f32 %v2880_v21, %v2830_v63  ;;  %v1349_v29 = vmul.f32 %v2880_v21, %v2824_v40  ;;  %v1351_v37 = vmul.f32 %v2880_v21, %v2826_v60 }
 0x480   :  { %v2882_v17 = vpop.eup %2035 }
 0x481   :  { %v1358_v51 = vmul.f32 %v2882_v17, %v2842_v45  ;;  %v1360_v18 = vmul.f32 %v2882_v17, %v2844_v0  ;;  %v1357_v1 = vmul.f32 %v2882_v17, %v2836_v44  ;;  %v1359_v24 = vmul.f32 %v2882_v17, %v2838_v49 }
 0x482   :  { %v1362_v63 = vmul.f32 %v2882_v17, %v1251_v56  ;;  %v1364_v2 = vmul.f32 %v2882_v17, %v1294_v22  ;;  %v1354_v45 = vmul.f32 %v2880_v21, %v2860_v9  ;;  %v1356_v0 = vmul.f32 %v2880_v21, %v2862_v11  ;;  %v2067_v56 = vld [vmem:[%s2977_s2 + $0x138] sm:$0xff]   ;;  %v2069_v9 = vld [vmem:[%s2977_s2 + $0x170] sm:$0xff]  }
 0x483   :  { %v1366_v40 = vpack.c.bf16 %v1358_v51, %v1350_v23  ;;  %v1368_v3 = vpack.c.bf16 %v1360_v18, %v1352_v20  ;;  %v1365_v6 = vpack.c.bf16 %v1357_v1, %v1349_v29  ;;  %v1367_v60 = vpack.c.bf16 %v1359_v24, %v1351_v37  ;;  %v2068_v22 = vld [vmem:[%s2977_s2 + $0x1b8] sm:$0xff]   ;;  %v2070_v11 = vld [vmem:[%s2977_s2 + $0x1f0] sm:$0xff]  }
 0x484   :  { %v1370_v44 = vpack.c.bf16 %v1362_v63, %v1354_v45  ;;  %v1372_v49 = vpack.c.bf16 %v1364_v2, %v1356_v0  ;;  %v2078_v51 = vmov 0.0   ;;  %v1574_v45 = vlaneseq }
 0x485   :  { %1405 = vmatprep.mubr.bf16.mxu0 %v1366_v40  ;;  %1446 = vmatprep.mubr.bf16.mxu1 %v1368_v3  ;;  %1585 = vst [vmem:[%s2982_s5 + $0x8] sm:$0xff] %v2078_v51 }
 0x486   :  { %1406 = vmatmul.mubr.bf16.vlgmr.msra.gmra.mxu0 %v1365_v6  ;;  %1447 = vmatmul.mubr.bf16.vlgmr.msra.gmra.mxu1 %v1367_v60  ;;  %v1575_v0 = vshrl.u32 %v1574_v45, 7 }
 0x487   :  { %1896 = vmatpush3.bf16.msra.mxu0 %v2067_v56  ;;  %1918 = vmatpush3.bf16.msra.mxu1 %v2068_v22 }
 0x488   :  { %1487 = vmatprep.mubr.bf16.mxu0 %v1370_v44  ;;  %1528 = vmatprep.mubr.bf16.mxu1 %v1372_v49  ;;  %vm1580_vm9 = vcmp.lt.s32.totalorder %v1575_v0, 2 }
 0x489   :  { %1897 = vmatprep.subr.bf16.mxu0 %v2069_v9  ;;  %1919 = vmatprep.subr.bf16.mxu1 %v2070_v11 }
 0x48b   :  { %1898 = vmatpush3.bf16.msra.mxu0 %v2071_v52  ;;  %1920 = vmatpush3.bf16.msra.mxu1 %v2072_v32 }
 0x48c   :  { %1899 = vmatprep.subr.bf16.mxu0 %v2073_v5  ;;  %1921 = vmatprep.subr.bf16.mxu1 %v2074_v7 }
 0x48f   :  { %1900 = vmatpush3.bf16.msra.mxu0 %v2075_v12  ;;  %1922 = vmatpush3.bf16.msra.mxu1 %v2076_v13 }
 0x490   :  { %1901 = vmatprep.subr.bf16.mxu0 %v3051_v41  ;;  %1923 = vmatprep.subr.bf16.mxu1 %v3052_v42  ;;  %v1361_v41 = vmul.f32 %v2882_v17, %v2868_v26  ;;  %v1363_v42 = vmul.f32 %v2882_v17, %v2870_v31 }
 0x493   :  { %1902 = vmatpush3.bf16.msra.mxu0 %v3053_v53  ;;  %1924 = vmatpush3.bf16.msra.mxu1 %v3054_v57  ;;  %v1353_v53 = vmul.f32 %v2880_v21, %v2852_v10  ;;  %v1355_v57 = vmul.f32 %v2880_v21, %v2854_v14 }
 0x494   :  { %1903 = vmatprep.subr.bf16.mxu0 %v3055_v33  ;;  %1925 = vmatprep.subr.bf16.mxu1 %v3056_v27 }
 0x495   :  { %v1369_v33 = vpack.c.bf16 %v1361_v41, %v1353_v53  ;;  %v1371_v27 = vpack.c.bf16 %v1363_v42, %v1355_v57 }
 0x497   :  { %1904 = vmatpush3.bf16.msra.mxu0 %v3057_v50  ;;  %1926 = vmatpush3.bf16.msra.mxu1 %v3058_v54 }
 0x498   :  { %1905 = vmatprep.subr.bf16.mxu0 %v3059_v55  ;;  %1927 = vmatprep.subr.bf16.mxu1 %v3060_v58 }
 0x49b   :  { %1906 = vmatpush3.bf16.msra.mxu0 %v3061_v59  ;;  %1928 = vmatpush3.bf16.msra.mxu1 %v3062_v61 }
 0x49c   :  { %1907 = vmatprep.subr.bf16.mxu0 %v3063_v62  ;;  %1929 = vmatprep.subr.bf16.mxu1 %v3064_v19 }
 0x49f   :  { %1908 = vmatpush3.bf16.msra.mxu0 %v3065_v28  ;;  %1930 = vmatpush3.bf16.msra.mxu1 %v3066_v36 }
 0x4a0   :  { %1909 = vmatprep.subr.bf16.mxu0 %v3067_v38  ;;  %1931 = vmatprep.subr.bf16.mxu1 %v3068_v46 }
 0x4a3   :  { %1910 = vmatpush3.bf16.msra.mxu0 %v3073_v8  ;;  %1932 = vmatpush3.bf16.msra.mxu1 %v2596_v34 }
 0x4a6   :  { %1488 = vmatmul.mubr.bf16.vlgmr.msra.gmra.mxu0 %v1369_v33  ;;  %1529 = vmatmul.mubr.bf16.vlgmr.msra.gmra.mxu1 %v1371_v27 }
 0x546   :  { %v1867_v50 = vpop.f32.mrf.mxu0  ;;  %v1889_v54 = vpop.f32.mrf.mxu1 }
 0x548   :  { %v1868_v55 = vpop.f32.mrf.mxu0  ;;  %v1890_v58 = vpop.f32.mrf.mxu1 }
 0x549   :  { %v1869_v28 = vadd.f32 %v1868_v55, %v1867_v50  ;;  %v1891_v36 = vadd.f32 %v1890_v58, %v1889_v54 }
 0x54a   :  { %v1870_v59 = vpop.f32.mrf.mxu0  ;;  %v1892_v61 = vpop.f32.mrf.mxu1 }
 0x54b   :  { %v1449_v14 = vadd.f32 %v1891_v36, %v1869_v28 }
 0x54c   :  { %v1871_v62 = vpop.f32.mrf.mxu0  ;;  %v1893_v19 = vpop.f32.mrf.mxu1 }
 0x566   :  { %v1911_v38 = vpop.f32.mrf.mxu0  ;;  %v1933_v46 = vpop.f32.mrf.mxu1 }
 0x568   :  { %v1912_v10 = vpop.f32.mrf.mxu0  ;;  %v1934_v8 = vpop.f32.mrf.mxu1 }
 0x569   :  { %v1913_v34 = vadd.f32 %v1912_v10, %v1911_v38  ;;  %v1935_v25 = vadd.f32 %v1934_v8, %v1933_v46 }
 0x56a   :  { %v1914_v26 = vpop.f32.mrf.mxu0  ;;  %v1936_v31 = vpop.f32.mrf.mxu1 }
 0x56b   :  { %v1490_v16 = vadd.f32 %v1913_v34, %v1449_v14 }
 0x56c   :  { %v1915_v35 = vpop.f32.mrf.mxu0  ;;  %v1937_v15 = vpop.f32.mrf.mxu1 }
 0x56d   :  { %v1531_v43 = vadd.f32 %v1935_v25, %v1490_v16 }
 0x56f   :  { %v1537_v48 = vadd.f32 %v1531_v43, %v2688_v4 }
 0x571   :  { %v1539_v21 = vsel %vm760_vm4, %v1537_v48, -inf }
 0x572   :  { %1540 = vmax.xlane.f32.xlu0 %v1539_v21 }
 0x5fb   :  { %v1541_v17 = vpop.xlane.xlu0 %1540 }
 0x5fc   :  { %v1545_v23 = vsub.f32 %v1537_v48, %v1541_v17 }
 0x5fe   :  { %v1547_v20 = vmul.f32 1.442695, %v1545_v23 }
 0x600   :  { %2037 = vpow2.f32 %v1547_v20 }
 0x601   :  { %2039 = vlog2.f32 %v2731_v47 }
 0x60d   :  { %v2038_v29 = vpop.eup %2037 }
 0x60e   :  { %v1551_v37 = vsel %vm760_vm4, %v2038_v29, 0.0  ;;  %v2040_v4 = vpop.eup %2039 }
 0x60f   :  { %1552 = vadd.xlane.f32.xlu1 %v1551_v37  ;;  %v784_v1 = vmul.f32 0.6931472, %v2040_v4 }
 0x611   :  { %v787_v40 = vsub.f32 %v2694_v30, %v784_v1 }
 0x698   :  { %v1553_v18 = vpop.xlane.xlu1 %1552 }
 0x699   :  { %2041 = vlog2.f32 %v1553_v18 }
 0x6a6   :  { %v2042_v24 = vpop.eup %2041 }
 0x6a7   :  { %v1558_v63 = vmul.f32 0.6931472, %v2042_v24 }
 0x6a9   :  { %v1561_v2 = vsub.f32 %v1545_v23, %v1558_v63 }
 0x6ab   :  { %v1563_v3 = vsub.f32 %v787_v40, %v1561_v2 }
 0x6ad   :  { %v1565_v6 = vmul.f32 %v1563_v3, %v2735_v39 }
 0x6af   :  { %v1567_v60 = vsel %vm760_vm4, %v1565_v6, 0.0 }
 0x6b0   :  { %1568 = vadd.xlane.f32.xlu0 %v1567_v60 }
 0x739   :  { %v1569_v44 = vpop.xlane.xlu0 %1568 }
 0x73a   :  { %v1582_v47 = vsel %vm1580_vm9, %v1569_v44, 0.0 }
 0x73b   :  { %1584 = vst [vmem:[%s2982_s5] sm:$0xff] %v1582_v47 }

</bundles_post_ra>
